<compile_context>
chip_gen: v7x
topology: tpu7x:2x2x1
jax: 0.10.0
libtpu: 0.0.40
codegen_flags: <defaults>
</compile_context>

<pallas_src>
import functools

import numpy as np

import jax
import jax.numpy as jnp
from jax import lax
from jax.experimental import pallas as pl
from jax.experimental.pallas import tpu as pltpu

LANES = 128  # TPU lane width: keep channel (output) dims multiples of this.


# ----------------------------------------------------------------------------
# Single fused Pallas kernel: conv12(+ReLU) -> conv13(+ReLU) -> dense
# ----------------------------------------------------------------------------
def _fused_kernel(p1_ref, w12_ref, b12_ref, s13_ref, w13_ref, b13_ref,
                  wd_ref, r_ref, bd_ref, o_ref):
    # conv2D_12: im2col patches (M1, 4*Cin) @ (4*Cin, C1p), fused bias + ReLU.
    h1 = jnp.dot(p1_ref[...], w12_ref[...], preferred_element_type=jnp.float32)
    h1 = jnp.maximum(h1 + b12_ref[...], 0.0).astype(jnp.bfloat16)      # (M1, C1p)

    # conv2D_13: each 2x2 tap = (row-selection matmul) then (tap-weight matmul).
    n_taps, m2, _ = s13_ref.shape
    c1p = w12_ref.shape[1]
    acc = jnp.zeros((m2, c1p), jnp.float32)
    for t in range(n_taps):                     # static, unrolled (4 taps)
        g = jnp.dot(s13_ref[t], h1, preferred_element_type=jnp.float32)
        acc = acc + jnp.dot(g.astype(jnp.bfloat16), w13_ref[t],
                            preferred_element_type=jnp.float32)
    h2 = jnp.maximum(acc + b13_ref[...], 0.0)                          # (M2, C1p) f32

    # dense_1: elementwise weight, per-sample row-block sum (R), lane sum, bias.
    u = h2 * wd_ref[...]                                               # (M2, C1p)
    v = jnp.dot(r_ref[...], u, preferred_element_type=jnp.float32)     # (N,  C1p)
    o_ref[...] = jnp.sum(v, axis=1, keepdims=True) + bd_ref[...]       # (N, 1)


# ----------------------------------------------------------------------------
# JAX glue: im2col for the first 2x2 conv (4 shifted slices on the raw input)
# ----------------------------------------------------------------------------
def _im2col_k2(x_nhwc, pad):
    n, h, w, c = x_nhwc.shape
    if pad:
        x_nhwc = jnp.pad(x_nhwc, ((0, 0), (pad, pad), (pad, pad), (0, 0)))
    oh = h + 2 * pad - 1
    ow = w + 2 * pad - 1
    cols = [x_nhwc[:, i:i + oh, j:j + ow, :] for i in range(2) for j in range(2)]
    patches = jnp.concatenate(cols, axis=-1)                # (n, oh, ow, 4*c)
    return patches.reshape(n * oh * ow, 4 * c), (n, oh, ow)


@functools.lru_cache(maxsize=None)
def _gather_mats(n, oh1, ow1, oh2, ow2):
    """0/1 row-selection matrices (compile-time constants, numpy)."""
    m1, m2 = n * oh1 * ow1, n * oh2 * ow2
    s = np.zeros((4, m2, m1), np.float32)
    for di in range(2):
        for dj in range(2):
            t = di * 2 + dj
            for b in range(n):
                for i in range(oh2):
                    for j in range(ow2):
                        s[t, b * oh2 * ow2 + i * ow2 + j,
                          b * oh1 * ow1 + (i + di) * ow1 + (j + dj)] = 1.0
    r = np.zeros((n, m2), np.float32)
    for b in range(n):
        r[b, b * oh2 * ow2:(b + 1) * oh2 * ow2] = 1.0
    return s, r


# ----------------------------------------------------------------------------
# Parameter construction (PyTorch-default-style uniform init) + one-time prep
# ----------------------------------------------------------------------------
def _conv_params(key, o, c, k):
    k1, k2 = jax.random.split(key)
    bound = 1.0 / (c * k * k) ** 0.5
    w = jax.random.uniform(k1, (o, c, k, k), jnp.float32, -bound, bound)
    b = jax.random.uniform(k2, (o,), jnp.float32, -bound, bound)
    return w, b


def _linear_params(key, out_features, in_features):
    k1, k2 = jax.random.split(key)
    bound = 1.0 / in_features ** 0.5
    w = jax.random.uniform(k1, (out_features, in_features), jnp.float32,
                           -bound, bound)
    b = jax.random.uniform(k2, (out_features,), jnp.float32, -bound, bound)
    return w, b


def init_bloc_params(key, num_filter_ens, num_filter_ens_2, out_features):
    k12, k13, kd = jax.random.split(key, 3)
    return {
        "conv12": _conv_params(k12, num_filter_ens_2[0], num_filter_ens[2], 2),
        "conv13": _conv_params(k13, num_filter_ens_2[0], num_filter_ens_2[0], 2),
        "dense": _linear_params(kd, 1, out_features),
    }


def prepare_params(raw, h_in, w_in):
    """One-time weight prep: MXU-friendly bf16, lane-padded (128) channel dims."""
    w12, b12 = raw["conv12"]            # (C1, Cin, 2, 2), (C1,)
    w13, b13 = raw["conv13"]            # (C1, C1, 2, 2),  (C1,)
    wd, bd = raw["dense"]               # (1, C1*H*W),     (1,)
    c1 = w12.shape[0]
    c1p = c1 + (-c1) % LANES
    oh2, ow2 = h_in, w_in               # conv12(k2,p1) then conv13(k2,p0) restores H,W
    assert wd.shape[1] == c1 * oh2 * ow2, (wd.shape, c1, oh2, ow2)

    # conv12 weight in im2col (ki, kj, cin) row order, lane-padded output chans.
    w12m = jnp.transpose(w12, (2, 3, 1, 0)).reshape(4 * w12.shape[1], c1)
    w12m = jnp.pad(w12m, ((0, 0), (0, c1p - c1))).astype(jnp.bfloat16)

    # conv13 per-tap weight matrices: (tap, c_in_pad, c_out_pad).
    taps = []
    for di in range(2):
        for dj in range(2):
            m = jnp.transpose(w13[:, :, di, dj])               # (c_in, c_out)
            taps.append(jnp.pad(m, ((0, c1p - c1), (0, c1p - c1))))
    w13t = jnp.stack(taps, axis=0).astype(jnp.bfloat16)        # (4, C1p, C1p)

    # dense weight reordered from PyTorch (c, oh, ow) flatten order to the
    # (oh, ow, padded-channel) order of the kernel's conv13 output rows.
    wdm = wd.reshape(c1, oh2, ow2)
    wdm = jnp.transpose(wdm, (1, 2, 0)).reshape(oh2 * ow2, c1)
    wdm = jnp.pad(wdm, ((0, 0), (0, c1p - c1))).astype(jnp.float32)

    def vecpad(b):
        return jnp.pad(b.reshape(1, -1), ((0, 0), (0, c1p - c1))).astype(jnp.float32)

    return {
        "w12": w12m, "b12": vecpad(b12),
        "w13t": w13t, "b13": vecpad(b13),
        "wd2d": wdm, "bd": bd.reshape(1, 1).astype(jnp.float32),
    }


# ----------------------------------------------------------------------------
# Forward pass (mirrors bloc_out_no_bn.forward) -- ONE Pallas launch
# ----------------------------------------------------------------------------
def bloc_out_no_bn_forward(prepped, x_nchw):
    x = jnp.transpose(x_nchw, (0, 2, 3, 1)).astype(jnp.bfloat16)     # NCHW -> NHWC
    n = x.shape[0]
    p1, (n, oh1, ow1) = _im2col_k2(x, pad=1)                         # (M1, 4*Cin)
    oh2, ow2 = oh1 - 1, ow1 - 1

    s13, r = _gather_mats(n, oh1, ow1, oh2, ow2)                     # np constants
    wd_tiled = jnp.tile(prepped["wd2d"], (n, 1))                     # (M2, C1p)

    vmem = pl.BlockSpec(memory_space=pltpu.MemorySpace.VMEM)
    return pl.pallas_call(
        _fused_kernel,
        out_shape=jax.ShapeDtypeStruct((n, 1), jnp.float32),
        in_specs=[vmem] * 9,
        out_specs=vmem,
    )(p1, prepped["w12"], prepped["b12"],
      jnp.asarray(s13, jnp.bfloat16), prepped["w13t"], prepped["b13"],
      wd_tiled, jnp.asarray(r, jnp.float32), prepped["bd"])


# ----------------------------------------------------------------------------
# Pure-JAX f32 reference for numerical sanity checking
# ----------------------------------------------------------------------------
def _reference_forward(raw, x_nchw):
    (w12, b12), (w13, b13), (wd, bd) = raw["conv12"], raw["conv13"], raw["dense"]
    dn = ("NCHW", "OIHW", "NCHW")
    y = lax.conv_general_dilated(x_nchw, w12, (1, 1), [(1, 1), (1, 1)],
                                 dimension_numbers=dn)
    y = jax.nn.relu(y + b12[None, :, None, None])
    y = lax.conv_general_dilated(y, w13, (1, 1), [(0, 0), (0, 0)],
                                 dimension_numbers=dn)
    y = jax.nn.relu(y + b13[None, :, None, None])
    y = y.reshape(y.shape[0], -1)
    return y @ wd.T + bd


# ----------------------------------------------------------------------------
if __name__ == "__main__":
    batch = 2
    num_filter_ens = [8, 16, 32]        # conv2D_12 input channels = num_filter_ens[2]
    num_filter_ens_2 = [16]
    spatial = 4                         # H = W of the input feature map
    out_features = num_filter_ens_2[0] * spatial * spatial

    key = jax.random.PRNGKey(0)
    kx, kp = jax.random.split(key)
    x = jax.random.normal(kx, (batch, num_filter_ens[2], spatial, spatial),
                          jnp.float32)

    raw = init_bloc_params(kp, num_filter_ens, num_filter_ens_2, out_features)
    prepped = prepare_params(raw, spatial, spatial)

    fwd = jax.jit(bloc_out_no_bn_forward)
    y = jax.block_until_ready(fwd(prepped, x))
    assert y.shape == (batch, 1), y.shape

    # bf16 operands with f32 accumulation -> expect ~1e-2-level agreement.
    y_ref = _reference_forward(raw, x)
    err = float(jnp.max(jnp.abs(y - y_ref)))
    scale = float(jnp.max(jnp.abs(y_ref))) + 1e-6
    assert err <= max(2e-2, 0.1 * scale), (err, scale)

    print("KERNEL_OK")
</pallas_src>

<mosaic_0001>
module attributes {stable_mosaic.version = 11 : i64} {
  func.func @_fused_kernel(%arg0: memref<50x128xbf16, #tpu.memory_space<vmem>>, %arg1: memref<128x128xbf16, #tpu.memory_space<vmem>>, %arg2: memref<1x128xf32, #tpu.memory_space<vmem>>, %arg3: memref<4x32x50xbf16, #tpu.memory_space<vmem>>, %arg4: memref<4x128x128xbf16, #tpu.memory_space<vmem>>, %arg5: memref<1x128xf32, #tpu.memory_space<vmem>>, %arg6: memref<32x128xf32, #tpu.memory_space<vmem>>, %arg7: memref<2x32xf32, #tpu.memory_space<vmem>>, %arg8: memref<1x1xf32, #tpu.memory_space<vmem>>, %arg9: memref<2x1xf32, #tpu.memory_space<vmem>>) attributes {dimension_semantics = [], scalar_prefetch = 0 : i64, scratch_operands = 0 : i64, tpu.core_type = #tpu.core_type<tc>} {
    %c0 = arith.constant 0 : index
    %c0_0 = arith.constant 0 : index
    %0 = vector.load %arg0[%c0, %c0_0] : memref<50x128xbf16, #tpu.memory_space<vmem>>, vector<50x128xbf16>
    %c0_1 = arith.constant 0 : index
    %c0_2 = arith.constant 0 : index
    %1 = vector.load %arg1[%c0_1, %c0_2] : memref<128x128xbf16, #tpu.memory_space<vmem>>, vector<128x128xbf16>
    %cst = arith.constant dense<0.000000e+00> : vector<50x128xf32>
    %2 = tpu.matmul %0, %1, %cst {dimension_numbers = #tpu.dot_dimension_numbers<[1], [0], [0], [1], [0, 0, 1, 1], [], []>} : vector<50x128xbf16>, vector<128x128xbf16>, vector<50x128xf32> -> vector<50x128xf32>
    %c0_3 = arith.constant 0 : index
    %c0_4 = arith.constant 0 : index
    %3 = vector.load %arg2[%c0_3, %c0_4] : memref<1x128xf32, #tpu.memory_space<vmem>>, vector<1x128xf32>
    %4 = vector.broadcast %3 : vector<1x128xf32> to vector<50x128xf32>
    %5 = arith.addf %2, %4 : vector<50x128xf32>
    %cst_5 = arith.constant 0.000000e+00 : f32
    %6 = vector.broadcast %cst_5 : f32 to vector<50x128xf32>
    %7 = arith.maximumf %5, %6 : vector<50x128xf32>
    %8 = arith.truncf %7 : vector<50x128xf32> to vector<50x128xbf16>
    %cst_6 = arith.constant 0.000000e+00 : f32
    %9 = vector.broadcast %cst_6 : f32 to vector<32x128xf32>
    %c0_7 = arith.constant 0 : index
    %c0_8 = arith.constant 0 : index
    %c0_9 = arith.constant 0 : index
    %10 = vector.load %arg3[%c0_7, %c0_8, %c0_9] : memref<4x32x50xbf16, #tpu.memory_space<vmem>>, vector<1x32x50xbf16>
    %11 = vector.shape_cast %10 : vector<1x32x50xbf16> to vector<32x50xbf16>
    %cst_10 = arith.constant dense<0.000000e+00> : vector<32x128xf32>
    %12 = tpu.matmul %11, %8, %cst_10 {dimension_numbers = #tpu.dot_dimension_numbers<[1], [0], [0], [1], [0, 0, 1, 1], [], []>} : vector<32x50xbf16>, vector<50x128xbf16>, vector<32x128xf32> -> vector<32x128xf32>
    %13 = arith.truncf %12 : vector<32x128xf32> to vector<32x128xbf16>
    %c0_11 = arith.constant 0 : index
    %c0_12 = arith.constant 0 : index
    %c0_13 = arith.constant 0 : index
    %14 = vector.load %arg4[%c0_11, %c0_12, %c0_13] : memref<4x128x128xbf16, #tpu.memory_space<vmem>>, vector<1x128x128xbf16>
    %15 = vector.shape_cast %14 : vector<1x128x128xbf16> to vector<128x128xbf16>
    %cst_14 = arith.constant dense<0.000000e+00> : vector<32x128xf32>
    %16 = tpu.matmul %13, %15, %cst_14 {dimension_numbers = #tpu.dot_dimension_numbers<[1], [0], [0], [1], [0, 0, 1, 1], [], []>} : vector<32x128xbf16>, vector<128x128xbf16>, vector<32x128xf32> -> vector<32x128xf32>
    %17 = arith.addf %9, %16 : vector<32x128xf32>
    %c1 = arith.constant 1 : index
    %c0_15 = arith.constant 0 : index
    %c0_16 = arith.constant 0 : index
    %18 = vector.load %arg3[%c1, %c0_15, %c0_16] : memref<4x32x50xbf16, #tpu.memory_space<vmem>>, vector<1x32x50xbf16>
    %19 = vector.shape_cast %18 : vector<1x32x50xbf16> to vector<32x50xbf16>
    %cst_17 = arith.constant dense<0.000000e+00> : vector<32x128xf32>
    %20 = tpu.matmul %19, %8, %cst_17 {dimension_numbers = #tpu.dot_dimension_numbers<[1], [0], [0], [1], [0, 0, 1, 1], [], []>} : vector<32x50xbf16>, vector<50x128xbf16>, vector<32x128xf32> -> vector<32x128xf32>
    %21 = arith.truncf %20 : vector<32x128xf32> to vector<32x128xbf16>
    %c1_18 = arith.constant 1 : index
    %c0_19 = arith.constant 0 : index
    %c0_20 = arith.constant 0 : index
    %22 = vector.load %arg4[%c1_18, %c0_19, %c0_20] : memref<4x128x128xbf16, #tpu.memory_space<vmem>>, vector<1x128x128xbf16>
    %23 = vector.shape_cast %22 : vector<1x128x128xbf16> to vector<128x128xbf16>
    %cst_21 = arith.constant dense<0.000000e+00> : vector<32x128xf32>
    %24 = tpu.matmul %21, %23, %cst_21 {dimension_numbers = #tpu.dot_dimension_numbers<[1], [0], [0], [1], [0, 0, 1, 1], [], []>} : vector<32x128xbf16>, vector<128x128xbf16>, vector<32x128xf32> -> vector<32x128xf32>
    %25 = arith.addf %17, %24 : vector<32x128xf32>
    %c2 = arith.constant 2 : index
    %c0_22 = arith.constant 0 : index
    %c0_23 = arith.constant 0 : index
    %26 = vector.load %arg3[%c2, %c0_22, %c0_23] : memref<4x32x50xbf16, #tpu.memory_space<vmem>>, vector<1x32x50xbf16>
    %27 = vector.shape_cast %26 : vector<1x32x50xbf16> to vector<32x50xbf16>
    %cst_24 = arith.constant dense<0.000000e+00> : vector<32x128xf32>
    %28 = tpu.matmul %27, %8, %cst_24 {dimension_numbers = #tpu.dot_dimension_numbers<[1], [0], [0], [1], [0, 0, 1, 1], [], []>} : vector<32x50xbf16>, vector<50x128xbf16>, vector<32x128xf32> -> vector<32x128xf32>
    %29 = arith.truncf %28 : vector<32x128xf32> to vector<32x128xbf16>
    %c2_25 = arith.constant 2 : index
    %c0_26 = arith.constant 0 : index
    %c0_27 = arith.constant 0 : index
    %30 = vector.load %arg4[%c2_25, %c0_26, %c0_27] : memref<4x128x128xbf16, #tpu.memory_space<vmem>>, vector<1x128x128xbf16>
    %31 = vector.shape_cast %30 : vector<1x128x128xbf16> to vector<128x128xbf16>
    %cst_28 = arith.constant dense<0.000000e+00> : vector<32x128xf32>
    %32 = tpu.matmul %29, %31, %cst_28 {dimension_numbers = #tpu.dot_dimension_numbers<[1], [0], [0], [1], [0, 0, 1, 1], [], []>} : vector<32x128xbf16>, vector<128x128xbf16>, vector<32x128xf32> -> vector<32x128xf32>
    %33 = arith.addf %25, %32 : vector<32x128xf32>
    %c3 = arith.constant 3 : index
    %c0_29 = arith.constant 0 : index
    %c0_30 = arith.constant 0 : index
    %34 = vector.load %arg3[%c3, %c0_29, %c0_30] : memref<4x32x50xbf16, #tpu.memory_space<vmem>>, vector<1x32x50xbf16>
    %35 = vector.shape_cast %34 : vector<1x32x50xbf16> to vector<32x50xbf16>
    %cst_31 = arith.constant dense<0.000000e+00> : vector<32x128xf32>
    %36 = tpu.matmul %35, %8, %cst_31 {dimension_numbers = #tpu.dot_dimension_numbers<[1], [0], [0], [1], [0, 0, 1, 1], [], []>} : vector<32x50xbf16>, vector<50x128xbf16>, vector<32x128xf32> -> vector<32x128xf32>
    %37 = arith.truncf %36 : vector<32x128xf32> to vector<32x128xbf16>
    %c3_32 = arith.constant 3 : index
    %c0_33 = arith.constant 0 : index
    %c0_34 = arith.constant 0 : index
    %38 = vector.load %arg4[%c3_32, %c0_33, %c0_34] : memref<4x128x128xbf16, #tpu.memory_space<vmem>>, vector<1x128x128xbf16>
    %39 = vector.shape_cast %38 : vector<1x128x128xbf16> to vector<128x128xbf16>
    %cst_35 = arith.constant dense<0.000000e+00> : vector<32x128xf32>
    %40 = tpu.matmul %37, %39, %cst_35 {dimension_numbers = #tpu.dot_dimension_numbers<[1], [0], [0], [1], [0, 0, 1, 1], [], []>} : vector<32x128xbf16>, vector<128x128xbf16>, vector<32x128xf32> -> vector<32x128xf32>
    %41 = arith.addf %33, %40 : vector<32x128xf32>
    %c0_36 = arith.constant 0 : index
    %c0_37 = arith.constant 0 : index
    %42 = vector.load %arg5[%c0_36, %c0_37] : memref<1x128xf32, #tpu.memory_space<vmem>>, vector<1x128xf32>
    %43 = vector.broadcast %42 : vector<1x128xf32> to vector<32x128xf32>
    %44 = arith.addf %41, %43 : vector<32x128xf32>
    %cst_38 = arith.constant 0.000000e+00 : f32
    %45 = vector.broadcast %cst_38 : f32 to vector<32x128xf32>
    %46 = arith.maximumf %44, %45 : vector<32x128xf32>
    %c0_39 = arith.constant 0 : index
    %c0_40 = arith.constant 0 : index
    %47 = vector.load %arg6[%c0_39, %c0_40] : memref<32x128xf32, #tpu.memory_space<vmem>>, vector<32x128xf32>
    %48 = arith.mulf %46, %47 : vector<32x128xf32>
    %c0_41 = arith.constant 0 : index
    %c0_42 = arith.constant 0 : index
    %49 = vector.load %arg7[%c0_41, %c0_42] : memref<2x32xf32, #tpu.memory_space<vmem>>, vector<2x32xf32>
    %cst_43 = arith.constant dense<0.000000e+00> : vector<2x128xf32>
    %50 = tpu.matmul %49, %48, %cst_43 {dimension_numbers = #tpu.dot_dimension_numbers<[1], [0], [0], [1], [0, 0, 1, 1], [], []>} : vector<2x32xf32>, vector<32x128xf32>, vector<2x128xf32> -> vector<2x128xf32>
    %cst_44 = arith.constant dense<0.000000e+00> : vector<2xf32>
    %51 = vector.multi_reduction <add>, %50, %cst_44 [1] : vector<2x128xf32> to vector<2xf32>
    %52 = vector.shape_cast %51 : vector<2xf32> to vector<2x1xf32>
    %c0_45 = arith.constant 0 : index
    %c0_46 = arith.constant 0 : index
    %53 = vector.load %arg8[%c0_45, %c0_46] : memref<1x1xf32, #tpu.memory_space<vmem>>, vector<1x1xf32>
    %54 = vector.broadcast %53 : vector<1x1xf32> to vector<2x1xf32>
    %55 = arith.addf %52, %54 : vector<2x1xf32>
    %c0_47 = arith.constant 0 : index
    %c0_48 = arith.constant 0 : index
    %56 = vector.load %arg9[%c0_47, %c0_48] : memref<2x1xf32, #tpu.memory_space<vmem>>, vector<2x1xf32>
    tpu.vector_store %arg9[%c0_47, %c0_48], %55 {strides = array<i32>} : memref<2x1xf32, #tpu.memory_space<vmem>>, vector<2x1xf32>,
    return
  }
}

</mosaic_0001>

<bundles_post_ra>
// kernel: bloc_out_no_bn_forward.1
= control target key start
LH: loop header
LB: loop body
LE: loop exit
PB: predicated region body
PF: predicated region fallthrough
CT: control target
= control target key end

     0   :  { %vm224_vm0 = vcmask 408576   ;;  %vm231_vm1 = vcmask 1040384   ;;  %vm1527_vm2 = vmmov 0   ;;  %vm989_vm3 = vcmask 261120   ;;  %s1775_s1 = inlined_call_operand.vmem [shape: bf16[128,128], index: 1, kind: input, shape index: {}]   ;;  %s1776_s0 = inlined_call_operand.vmem [shape: bf16[50,128], index: 0, kind: input, shape index: {}]   ;;  %s1777_s3 = inlined_call_operand.vmem [shape: bf16[4,32,50], index: 3, kind: input, shape index: {}]   ;;  %s1778_s4 = inlined_call_operand.vmem [shape: bf16[4,128,128], index: 4, kind: input, shape index: {}]   ;;  %s1779_s2 = inlined_call_operand.vmem [shape: f32[1,128], index: 2, kind: input, shape index: {}]   ;;  %s1780_s5 = inlined_call_operand.vmem [shape: f32[1,128], index: 5, kind: input, shape index: {}]   ;;  %s1781_s6 = inlined_call_operand.vmem [shape: f32[32,128], index: 6, kind: input, shape index: {}]   ;;  %s1782_s7 = inlined_call_operand.vmem [shape: f32[2,32], index: 7, kind: input, shape index: {}]   ;;  %s1783_s8 = inlined_call_operand.<no memory space> [shape: f32[1,1], index: 8, kind: input, shape index: {}]   ;;  %s1784_s9 = inlined_call_operand.vmem [shape: f32[2,1], index: 9, kind: output, shape index: {}]  }
   0x1   :  { %v1474_v0 = vld [vmem:[%s1775_s1] sm:$0xff]   ;;  %v1475_v1 = vld [vmem:[%s1775_s1 + $0x8] sm:$0xff]   ;;  %v1476_v2 = vld [vmem:[%s1775_s1 + $0x10] sm:$0xff]   ;;  %vm1063_vm4 = vcmask 1041408   ;;  %vm1075_vm5 = vcmask 1024  }
   0x2   :  { %1286 = vmatprep.subr.bf16.mxu1 %v1474_v0  ;;  %v1477_v3 = vld [vmem:[%s1775_s1 + $0x18] sm:$0xff]   ;;  %v1482_v4 = vld [vmem:[%s1776_s0] sm:$0xff]   ;;  %v1479_v6 = vld [vmem:[%s1775_s1 + $0x28] sm:$0xff]  }
   0x3   :  { %1287 = vmatpush3.bf16.msra.mxu1 %v1474_v0  ;;  %1302 = vmatprep.mubr.bf16.mxu1 %v1482_v4  ;;  %v1478_v5 = vld [vmem:[%s1775_s1 + $0x20] sm:$0xff]   ;;  %v1480_v7 = vld [vmem:[%s1775_s1 + $0x30] sm:$0xff]   ;;  %v1481_v8 = vld [vmem:[%s1775_s1 + $0x38] sm:$0xff]  }
   0x4   :  { %1288 = vmatprep.subr.bf16.mxu1 %v1475_v1  ;;  %v1483_v9 = vld [vmem:[%s1776_s0 + $0x8] sm:$0xff]   ;;  %v1484_v10 = vld [vmem:[%s1776_s0 + $0x10] sm:$0xff]   ;;  %v1485_v11 = vld [vmem:[%s1776_s0 + $0x18] ss:$0 sps:$4 sm:$0x11]  }
   0x5   :  { %v1486_v12 = vld [vmem:[%s1777_s3] sm:$0xff]   ;;  %v1495_v14 = vld [vmem:[%s1778_s4 + $0x48] sm:$0xff]   ;;  %v1496_v15 = vld [vmem:[%s1778_s4 + $0x50] sm:$0xff]  }
   0x6   :  { %v1494_v13 = vld [vmem:[%s1778_s4 + $0x40] sm:$0xff]   ;;  %v1487_v44 = vld [vmem:[%s1777_s3 + $0x8] sm:$0xff]   ;;  %v1488_v45 = vld [vmem:[%s1777_s3 + $0x10] sm:$0xff]  }
   0x7   :  { %1289 = vmatpush3.bf16.msra.mxu1 %v1475_v1  ;;  %1334 = vmatprep.subr.bf16.mxu0 %v1494_v13  ;;  %v1081_v16 = vld [vmem:[%s1779_s2] ss:$0 sm:$0xff]  ;;  %v1489_v46 = vld [vmem:[%s1777_s3 + $0x18] sm:$0xff]   ;;  %v1491_v48 = vld [vmem:[%s1777_s3 + $0x28] sm:$0xff]  }
   0x8   :  { %1290 = vmatprep.subr.bf16.mxu1 %v1476_v2  ;;  %1335 = vmatpush3.bf16.msra.mxu0 %v1494_v13  ;;  %v1490_v47 = vld [vmem:[%s1777_s3 + $0x20] sm:$0xff]   ;;  %v1492_v49 = vld [vmem:[%s1777_s3 + $0x30] sm:$0xff]   ;;  %v1493_v50 = vld [vmem:[%s1777_s3 + $0x38] sm:$0xff]  }
   0x9   :  { %1336 = vmatprep.subr.bf16.mxu0 %v1495_v14  ;;  %v1497_v51 = vld [vmem:[%s1778_s4 + $0x58] sm:$0xff]   ;;  %v1498_v52 = vld [vmem:[%s1778_s4 + $0x60] sm:$0xff]   ;;  %v1499_v53 = vld [vmem:[%s1778_s4 + $0x68] sm:$0xff]  }
   0xa   :  { %v1500_v54 = vld [vmem:[%s1778_s4 + $0x70] sm:$0xff]   ;;  %v1501_v55 = vld [vmem:[%s1778_s4 + $0x78] sm:$0xff]   ;;  %v1502_v56 = vld [vmem:[%s1778_s4] sm:$0xff]  }
   0xb   :  { %1291 = vmatpush3.bf16.msra.mxu1 %v1476_v2 }
   0xc   :  { %1292 = vmatprep.subr.bf16.mxu1 %v1477_v3  ;;  %1337 = vmatpush3.bf16.msra.mxu0 %v1495_v14 }
   0xd   :  { %1338 = vmatprep.subr.bf16.mxu0 %v1496_v15 }
   0xf   :  { %1293 = vmatpush3.bf16.msra.mxu1 %v1477_v3 }
  0x10   :  { %1294 = vmatprep.subr.bf16.mxu1 %v1478_v5  ;;  %1339 = vmatpush3.bf16.msra.mxu0 %v1496_v15  ;;  %v1507_v15 = vld [vmem:[%s1778_s4 + $0x28] sm:$0xff]  }
  0x11   :  { %1340 = vmatprep.subr.bf16.mxu0 %v1497_v51 }
  0x13   :  { %1295 = vmatpush3.bf16.msra.mxu1 %v1478_v5  ;;  %v1503_v5 = vld [vmem:[%s1778_s4 + $0x8] sm:$0xff]  }
  0x14   :  { %1296 = vmatprep.subr.bf16.mxu1 %v1479_v6  ;;  %1341 = vmatpush3.bf16.msra.mxu0 %v1497_v51  ;;  %v982_v51 = vld [vmem:[%s1781_s6 + $0x10] sm:$0xff] }
  0x15   :  { %1342 = vmatprep.subr.bf16.mxu0 %v1498_v52 }
  0x17   :  { %1297 = vmatpush3.bf16.msra.mxu1 %v1479_v6  ;;  %v1504_v6 = vld [vmem:[%s1778_s4 + $0x10] sm:$0xff]  }
  0x18   :  { %1298 = vmatprep.subr.bf16.mxu1 %v1480_v7  ;;  %1343 = vmatpush3.bf16.msra.mxu0 %v1498_v52 }
  0x19   :  { %1344 = vmatprep.subr.bf16.mxu0 %v1499_v53 }
  0x1b   :  { %1299 = vmatpush3.bf16.msra.mxu1 %v1480_v7  ;;  %v1505_v7 = vld [vmem:[%s1778_s4 + $0x18] sm:$0xff]  }
  0x1c   :  { %1300 = vmatprep.subr.bf16.mxu1 %v1481_v8  ;;  %1345 = vmatpush3.bf16.msra.mxu0 %v1499_v53  ;;  %v983_v53 = vld [vmem:[%s1781_s6 + $0x18] sm:$0xff] }
  0x1d   :  { %1346 = vmatprep.subr.bf16.mxu0 %v1500_v54 }
  0x1f   :  { %1301 = vmatpush3.bf16.msra.mxu1 %v1481_v8 }
  0x20   :  { %1347 = vmatpush3.bf16.msra.mxu0 %v1500_v54 }
  0x21   :  { %1348 = vmatprep.subr.bf16.mxu0 %v1501_v55 }
  0x22   :  { %1303 = vmatmul.mubr.bf16.vlgmr.msra.gmra.mrb[0].mxu1 %v1483_v9  ;;  %v1506_v9 = vld [vmem:[%s1778_s4 + $0x20] sm:$0xff]  }
  0x23   :  { %1306 = vmatprep.mubr.bf16.mxu1 %v1484_v10 }
  0x24   :  { %1349 = vmatpush3.bf16.msra.mxu0 %v1501_v55  ;;  %v980_v55 = vld [vmem:[%s1781_s6] sm:$0xff] }
  0x25   :  { %1354 = vmatprep.subr.bf16.mxu0 %v1502_v56 }
  0x2a   :  { %1307 = vmatmul.mubr.bf16.gmra.mrb[4].mxu1 %v1485_v11 }
  0x2b   :  { %1318 = vmatprep.mubr.msk.bf16.mxu1 %vm224_vm0, %v1486_v12 }
  0xf5   :  { %v1304_v17 = vpop.f32.mrb[0].mxu1 }
  0xf6   :  { %v178_v18 = vadd.f32 %v1304_v17, %v1081_v16  ;;  %v169_v19 = vpop.f32.mrb[1].mxu1  ;;  %v1509_v17 = vld [vmem:[%s1778_s4 + $0x38] sm:$0xff]  }
  0xf7   :  { %v170_v20 = vadd.f32 %v1081_v16, %v169_v19  ;;  %v1305_v21 = vpop.f32.mrb[2].mxu1  ;;  %v1510_v19 = vld [vmem:[%s1778_s4 + $0x80] sm:$0xff]  }
  0xf8   :  { %v181_v22 = vadd.f32 %v1305_v21, %v1081_v16  ;;  %v172_v23 = vpop.f32.mrb[3].mxu1  ;;  %v201_v25 = vmax.f32 %v178_v18, 0.0 }
  0xf9   :  { %v173_v24 = vadd.f32 %v1081_v16, %v172_v23  ;;  %v199_v27 = vmax.f32 %v170_v20, 0.0 }
  0xfa   :  { %v202_v26 = vmax.f32 %v181_v22, 0.0 }
  0xfb   :  { %v200_v28 = vmax.f32 %v173_v24, 0.0 }
  0xfc   :  { %v207_v29 = vpack.c.bf16 %v202_v26, %v201_v25  ;;  %v1511_v25 = vld [vmem:[%s1778_s4 + $0x88] sm:$0xff]   ;;  %v1512_v26 = vld [vmem:[%s1778_s4 + $0x90] sm:$0xff]  }
  0xfd   :  { %v206_v30 = vpack.c.bf16 %v200_v28, %v199_v27  ;;  %v1308_v31 = vpop.f32.mrb[4].mxu1  ;;  %v1513_v27 = vld [vmem:[%s1778_s4 + $0x98] sm:$0xff]   ;;  %v1514_v28 = vld [vmem:[%s1778_s4 + $0xa0] sm:$0xff]  }
  0xfe   :  { %v185_v32 = vpop.f32.mrb[5].mxu1  ;;  %v194_v33 = vadd.f32 %v1308_v31, %v1081_v16  ;;  %v1517_v31 = vld [vmem:[%s1778_s4 + $0xb8] sm:$0xff]  }
  0xff   :  { %v186_v34 = vadd.f32 %v1081_v16, %v185_v32  ;;  %v1309_v35 = vpop.f32.mrb[6].mxu1  ;;  %1310 = vmatprep.subr.bf16.mxu1 %v206_v30  ;;  %v1518_v32 = vld [vmem:[%s1778_s4 + $0xc0] sm:$0xff]  }
 0x100   :  { %v188_v36 = vpop.f32.mrb[7].mxu1  ;;  %1311 = vmatpush3.bf16.msra.mxu1 %v206_v30  ;;  %v205_v38 = vmax.f32 %v194_v33, 0.0  ;;  %v1519_v33 = vld [vmem:[%s1778_s4 + $0xc8] sm:$0xff]   ;;  %v1521_v35 = vld [vmem:[%s1778_s4 + $0xd8] sm:$0xff]  }
 0x101   :  { %v189_v37 = vadd.f32 %v1081_v16, %v188_v36  ;;  %1312 = vmatprep.subr.bf16.mxu1 %v207_v29  ;;  %v203_v39 = vmax.f32 %v186_v34, 0.0  ;;  %v1508_v16 = vld [vmem:[%s1778_s4 + $0x30] sm:$0xff]   ;;  %v1522_v36 = vld [vmem:[%s1778_s4 + $0xe0] sm:$0xff]  }
 0x102   :  { %v209_v42 = vpack.c.bf16 %v205_v38, %v205_v38  ;;  %v1520_v34 = vld [vmem:[%s1778_s4 + $0xd0] sm:$0xff]  }
 0x103   :  { %v204_v40 = vmax.f32 %v189_v37, 0.0  ;;  %v1523_v37 = vld [vmem:[%s1778_s4 + $0xe8] sm:$0xff]   ;;  %v1524_v38 = vld [vmem:[%s1778_s4 + $0xf0] sm:$0xff]  }
 0x104   :  { %1313 = vmatpush3.bf16.msra.mxu1 %v207_v29  ;;  %v233_v43 = vsel %vm231_vm1, %v209_v42, 0 }
 0x105   :  { %v208_v41 = vpack.c.bf16 %v204_v40, %v203_v39  ;;  %v1525_v39 = vld [vmem:[%s1778_s4 + $0xf8] sm:$0xff]   ;;  %v1526_v40 = vmov 0.0|0.0  }
 0x107   :  { %1314 = vmatprep.subr.bf16.mxu1 %v208_v41 }
 0x108   :  { %1315 = vmatpush3.bf16.msra.mxu1 %v208_v41 }
 0x109   :  { %1467 = vmatprep.subr.msk.bf16.mxu1 %vm231_vm1, %v209_v42 }
 0x10c   :  { %1317 = vmatpush3.bf16.msra.mxu1 %v233_v43 }
 0x10d   :  { %1322 = vmatprep.subr.bf16.mxu1 %v206_v30 }
 0x10f   :  { %1319 = vmatmul.mubr.msk.bf16.vlgmr.msra.gmra.mrb[8].mxu1 %vm224_vm0, %v1487_v44 }
 0x110   :  { %1323 = vmatpush3.bf16.msra.mxu1 %v206_v30  ;;  %1330 = vmatprep.mubr.msk.bf16.mxu1 %vm224_vm0, %v1488_v45 }
 0x111   :  { %1324 = vmatprep.subr.bf16.mxu1 %v207_v29 }
 0x114   :  { %1325 = vmatpush3.bf16.msra.mxu1 %v207_v29 }
 0x115   :  { %1326 = vmatprep.subr.bf16.mxu1 %v208_v41 }
 0x118   :  { %1327 = vmatpush3.bf16.msra.mxu1 %v208_v41 }
 0x119   :  { %1468 = vmatprep.subr.msk.bf16.mxu1 %vm231_vm1, %v209_v42 }
 0x11c   :  { %1329 = vmatpush3.bf16.msra.mxu1 %v233_v43 }
 0x11d   :  { %1374 = vmatprep.subr.bf16.mxu1 %v206_v30 }
 0x11f   :  { %1331 = vmatmul.mubr.msk.bf16.vlgmr.msra.gmra.mrb[12].mxu1 %vm224_vm0, %v1489_v46 }
 0x120   :  { %1375 = vmatpush3.bf16.msra.mxu1 %v206_v30  ;;  %1382 = vmatprep.mubr.msk.bf16.mxu1 %vm224_vm0, %v1490_v47 }
 0x121   :  { %1376 = vmatprep.subr.bf16.mxu1 %v207_v29 }
 0x124   :  { %1377 = vmatpush3.bf16.msra.mxu1 %v207_v29 }
 0x125   :  { %1378 = vmatprep.subr.bf16.mxu1 %v208_v41 }
 0x128   :  { %1379 = vmatpush3.bf16.msra.mxu1 %v208_v41 }
 0x129   :  { %1469 = vmatprep.subr.msk.bf16.mxu1 %vm231_vm1, %v209_v42 }
 0x12c   :  { %1381 = vmatpush3.bf16.msra.mxu1 %v233_v43 }
 0x12d   :  { %1406 = vmatprep.subr.bf16.mxu1 %v206_v30 }
 0x12f   :  { %1383 = vmatmul.mubr.msk.bf16.vlgmr.msra.gmra.mrb[16].mxu1 %vm224_vm0, %v1491_v48 }
 0x130   :  { %1407 = vmatpush3.bf16.msra.mxu1 %v206_v30  ;;  %1414 = vmatprep.mubr.msk.bf16.mxu1 %vm224_vm0, %v1492_v49  ;;  %v1516_v30 = vld [vmem:[%s1778_s4 + $0xb0] sm:$0xff]  }
 0x131   :  { %1408 = vmatprep.subr.bf16.mxu1 %v207_v29 }
 0x134   :  { %1409 = vmatpush3.bf16.msra.mxu1 %v207_v29  ;;  %v1515_v29 = vld [vmem:[%s1778_s4 + $0xa8] sm:$0xff]  }
 0x135   :  { %1410 = vmatprep.subr.bf16.mxu1 %v208_v41 }
 0x138   :  { %1411 = vmatpush3.bf16.msra.mxu1 %v208_v41  ;;  %v1528_v41 = vmov 0.0  }
 0x139   :  { %1470 = vmatprep.subr.msk.bf16.mxu1 %vm231_vm1, %v209_v42  ;;  %v1202_v42 = vld [vmem:[%s1780_s5] ss:$0 sm:$0xff] }
 0x13c   :  { %1413 = vmatpush3.bf16.msra.mxu1 %v233_v43 }
 0x13d   :  { %1449 = vmatprep.subr.bf16.mxu1 %v1526_v40 }
 0x13f   :  { %1415 = vmatmul.mubr.msk.bf16.vlgmr.msra.gmra.mrb[20].mxu1 %vm224_vm0, %v1493_v50 }
 0x140   :  { %1446 = vmatprep.mubr.msk.f32.mxu1 %vm1527_vm2, %v1528_v41 }
 0x1e2   :  { %v1320_v57 = vpop.f32.mrb[8].mxu1 }
 0x1e3   :  { %v269_v58 = vpop.f32.mrb[9].mxu1 }
 0x1e4   :  { %v1321_v59 = vpop.f32.mrb[10].mxu1 }
 0x1e5   :  { %v285_v60 = vpack.c.bf16 %v1321_v59, %v1320_v57  ;;  %v272_v61 = vpop.f32.mrb[11].mxu1  ;;  %v981_v57 = vld [vmem:[%s1781_s6 + $0x8] sm:$0xff] }
 0x1e6   :  { %v284_v62 = vpack.c.bf16 %v272_v61, %v269_v58 }
 0x1f2   :  { %v1332_v63 = vpop.f32.mrb[12].mxu1 }
 0x1f3   :  { %v357_v0 = vpop.f32.mrb[13].mxu1 }
 0x1f4   :  { %v1333_v1 = vpop.f32.mrb[14].mxu1 }
 0x1f5   :  { %v373_v2 = vpack.c.bf16 %v1333_v1, %v1332_v63  ;;  %v360_v3 = vpop.f32.mrb[15].mxu1  ;;  %v988_v1 = vld [vmem:[%s1782_s7] sm:$0x3] }
 0x1f6   :  { %v372_v4 = vpack.c.bf16 %v360_v3, %v357_v0 }
 0x1f8   :  { %1350 = vmatprep.mubr.bf16.mxu0 %v372_v4 }
 0x1f9   :  { %1351 = vmatmul.mubr.bf16.vlgmr.msra.gmra.mrb[0].mxu0 %v373_v2  ;;  %v14_v2 = vstv %s1783_s8 }
 0x1fa   :  { %1355 = vmatpush3.bf16.msra.mxu0 %v1502_v56  ;;  %1370 = vmatprep.mubr.bf16.mxu0 %v284_v62  ;;  %15 = vst [vmem:[#allocation2] sm:$0x1] %v14_v2 }
 0x1fb   :  { %1356 = vmatprep.subr.bf16.mxu0 %v1503_v5 }
 0x1fe   :  { %1357 = vmatpush3.bf16.msra.mxu0 %v1503_v5 }
 0x1ff   :  { %1358 = vmatprep.subr.bf16.mxu0 %v1504_v6 }
 0x202   :  { %1359 = vmatpush3.bf16.msra.mxu0 %v1504_v6  ;;  %v1384_v8 = vpop.f32.mrb[16].mxu1  ;;  %v1204_v6 = vld [vmem:[#allocation2] ss:$0 sm:$0xff] }
 0x203   :  { %1360 = vmatprep.subr.bf16.mxu0 %v1505_v7  ;;  %v640_v10 = vpop.f32.mrb[17].mxu1 }
 0x204   :  { %v1385_v11 = vpop.f32.mrb[18].mxu1 }
 0x205   :  { %v656_v12 = vpack.c.bf16 %v1385_v11, %v1384_v8  ;;  %v643_v13 = vpop.f32.mrb[19].mxu1 }
 0x206   :  { %1361 = vmatpush3.bf16.msra.mxu0 %v1505_v7  ;;  %v655_v14 = vpack.c.bf16 %v643_v13, %v640_v10 }
 0x207   :  { %1362 = vmatprep.subr.bf16.mxu0 %v1506_v9 }
 0x20a   :  { %1363 = vmatpush3.bf16.msra.mxu0 %v1506_v9 }
 0x20b   :  { %1364 = vmatprep.subr.bf16.mxu0 %v1507_v15 }
 0x20e   :  { %1365 = vmatpush3.bf16.msra.mxu0 %v1507_v15 }
 0x20f   :  { %1366 = vmatprep.subr.bf16.mxu0 %v1508_v16 }
 0x212   :  { %1367 = vmatpush3.bf16.msra.mxu0 %v1508_v16  ;;  %v1416_v18 = vpop.f32.mrb[20].mxu1 }
 0x213   :  { %1368 = vmatprep.subr.bf16.mxu0 %v1509_v17  ;;  %v830_v20 = vpop.f32.mrb[21].mxu1 }
 0x214   :  { %v1417_v21 = vpop.f32.mrb[22].mxu1 }
 0x215   :  { %v846_v22 = vpack.c.bf16 %v1417_v21, %v1416_v18  ;;  %v833_v23 = vpop.f32.mrb[23].mxu1 }
 0x216   :  { %1369 = vmatpush3.bf16.msra.mxu0 %v1509_v17  ;;  %v845_v24 = vpack.c.bf16 %v833_v23, %v830_v20 }
 0x217   :  { %1386 = vmatprep.subr.bf16.mxu0 %v1510_v19 }
 0x219   :  { %1371 = vmatmul.mubr.bf16.vlgmr.msra.gmra.mrb[0].mxu0 %v285_v60 }
 0x21a   :  { %1387 = vmatpush3.bf16.msra.mxu0 %v1510_v19  ;;  %1402 = vmatprep.mubr.bf16.mxu0 %v655_v14 }
 0x21b   :  { %1388 = vmatprep.subr.bf16.mxu0 %v1511_v25 }
 0x21e   :  { %1389 = vmatpush3.bf16.msra.mxu0 %v1511_v25 }
 0x21f   :  { %1390 = vmatprep.subr.bf16.mxu0 %v1512_v26 }
 0x222   :  { %1391 = vmatpush3.bf16.msra.mxu0 %v1512_v26 }
 0x223   :  { %1392 = vmatprep.subr.bf16.mxu0 %v1513_v27 }
 0x226   :  { %1393 = vmatpush3.bf16.msra.mxu0 %v1513_v27 }
 0x227   :  { %1394 = vmatprep.subr.bf16.mxu0 %v1514_v28 }
 0x22a   :  { %1395 = vmatpush3.bf16.msra.mxu0 %v1514_v28 }
 0x22b   :  { %1396 = vmatprep.subr.bf16.mxu0 %v1515_v29 }
 0x22e   :  { %1397 = vmatpush3.bf16.msra.mxu0 %v1515_v29 }
 0x22f   :  { %1398 = vmatprep.subr.bf16.mxu0 %v1516_v30 }
 0x232   :  { %1399 = vmatpush3.bf16.msra.mxu0 %v1516_v30 }
 0x233   :  { %1400 = vmatprep.subr.bf16.mxu0 %v1517_v31 }
 0x236   :  { %1401 = vmatpush3.bf16.msra.mxu0 %v1517_v31 }
 0x237   :  { %1418 = vmatprep.subr.bf16.mxu0 %v1518_v32 }
 0x239   :  { %1403 = vmatmul.mubr.bf16.vlgmr.msra.gmra.mrb[0].mxu0 %v656_v12 }
 0x23a   :  { %1419 = vmatpush3.bf16.msra.mxu0 %v1518_v32  ;;  %1434 = vmatprep.mubr.bf16.mxu0 %v845_v24 }
 0x23b   :  { %1420 = vmatprep.subr.bf16.mxu0 %v1519_v33 }
 0x23e   :  { %1421 = vmatpush3.bf16.msra.mxu0 %v1519_v33 }
 0x23f   :  { %1422 = vmatprep.subr.bf16.mxu0 %v1520_v34 }
 0x242   :  { %1423 = vmatpush3.bf16.msra.mxu0 %v1520_v34 }
 0x243   :  { %1424 = vmatprep.subr.bf16.mxu0 %v1521_v35 }
 0x246   :  { %1425 = vmatpush3.bf16.msra.mxu0 %v1521_v35 }
 0x247   :  { %1426 = vmatprep.subr.bf16.mxu0 %v1522_v36 }
 0x24a   :  { %1427 = vmatpush3.bf16.msra.mxu0 %v1522_v36 }
 0x24b   :  { %1428 = vmatprep.subr.bf16.mxu0 %v1523_v37 }
 0x24e   :  { %1429 = vmatpush3.bf16.msra.mxu0 %v1523_v37 }
 0x24f   :  { %1430 = vmatprep.subr.bf16.mxu0 %v1524_v38 }
 0x252   :  { %1431 = vmatpush3.bf16.msra.mxu0 %v1524_v38 }
 0x253   :  { %1432 = vmatprep.subr.bf16.mxu0 %v1525_v39 }
 0x256   :  { %1433 = vmatpush3.bf16.msra.mxu0 %v1525_v39 }
 0x259   :  { %1435 = vmatmul.mubr.bf16.vlgmr.msra.gmra.mrb[0].mxu0 %v846_v22 }
 0x32c   :  { %v1436_v43 = vpop.f32.mrb[0].mxu0 }
 0x32d   :  { %v974_v44 = vadd.f32 %v1436_v43, %v1202_v42  ;;  %v946_v45 = vpop.f32.mrb[1].mxu0 }
 0x32e   :  { %v972_v46 = vadd.f32 %v1202_v42, %v946_v45  ;;  %v1437_v47 = vpop.f32.mrb[2].mxu0 }
 0x32f   :  { %v978_v48 = vmax.f32 %v974_v44, 0.0  ;;  %v975_v49 = vadd.f32 %v1437_v47, %v1202_v42  ;;  %v949_v50 = vpop.f32.mrb[3].mxu0 }
 0x330   :  { %v976_v52 = vmax.f32 %v972_v46, 0.0  ;;  %v973_v54 = vadd.f32 %v1202_v42, %v949_v50 }
 0x331   :  { %v979_v56 = vmax.f32 %v975_v49, 0.0  ;;  %v986_v59 = vmul.f32 %v982_v51, %v978_v48 }
 0x332   :  { %v977_v58 = vmax.f32 %v973_v54, 0.0  ;;  %v984_v61 = vmul.f32 %v980_v55, %v976_v52 }
 0x333   :  { %v987_v60 = vmul.f32 %v983_v53, %v979_v56 }
 0x334   :  { %v985_v62 = vmul.f32 %v981_v57, %v977_v58 }
 0x335   :  { %v1453_v63 = vpack.c.bf16 %v987_v60, %v986_v59 }
 0x336   :  { %v1450_v0 = vpack.c.bf16 %v985_v62, %v984_v61 }
 0x338   :  { %1451 = vmatpush3.bf16.msra.mxu1 %v1450_v0 }
 0x339   :  { %1452 = vmatprep.subr.bf16.mxu1 %v1526_v40 }
 0x33c   :  { %1454 = vmatpush3.bf16.msra.mxu1 %v1453_v63 }
 0x33f   :  { %1447 = vmatmul.mubr.msk.f32.vlgmr.msra.gmra.mrb[24].mxu1 %vm989_vm3, %v988_v1 }
 0x412   :  { %v1059_v3 = vpop.f32.mrb[24].mxu1 }
 0x413   :  { %v1448_v4 = vpop.f32.mrb[25].mxu1  ;;  %v1064_v5 = vsel %vm1063_vm4, %v1059_v3, 0.0 }
 0x414   :  { %1065 = vadd.xlane.f32.xlu0 %v1064_v5 }
 0x4a1   :  { %v1066_v7 = vpop.xlane.xlu0 %1065 }
 0x4a2   :  { %v1074_v8 = vadd.f32 %v1204_v6, %v1066_v7 }
 0x4a4   :  { %1076 = vst.msk [vmem:[%s1784_s9] sm:$0x3] %vm1075_vm5, %v1074_v8 }

</bundles_post_ra>
